<compile_context>
chip_gen: v6e
topology: v6e:2x2x1
jax: 0.10.0
libtpu: 0.0.40
codegen_flags: <defaults>
</compile_context>

<pallas_src>
import numpy as np
import jax
import jax.numpy as jnp
from jax.experimental import pallas as pl
from jax.experimental.pallas import tpu as pltpu

_BN_EPS = 1e-5
_PAD_S = 2          # scratch row padding = max(conv pads) = 2 (5x5 branch)


# --------------------------------------------------------------------------- #
# Host-side, one-time parameter repacking (plain numpy — setup glue).
# --------------------------------------------------------------------------- #
def _banded_conv_matrix(w_oihw, kh, W, pad):
    """Banded matrix B such that (row-slab @ B) performs, for one kernel row kh,
    the kw/ci contraction of the conv with the W zero-padding folded in:
      B[(w + kw - pad)*Cin + ci, w*Cout + co] = w_oihw[co, ci, kh, kw]
    (entries whose source column falls outside [0, W) are simply dropped)."""
    Cout, Cin, K, _ = w_oihw.shape
    B = np.zeros((W * Cin, W * Cout), np.float32)
    for w in range(W):
        for kw in range(K):
            c = w + kw - pad
            if 0 <= c < W:
                B[c * Cin:(c + 1) * Cin, w * Cout:(w + 1) * Cout] = w_oihw[:, :, kh, kw].T
    return B


def fold_params(w3, b3, bn3, w5, b5, bn5, H, W):
    """Repack conv weights into banded matrices and fold conv-bias + eval-mode
    BatchNorm into per-channel scale/shift vectors (tiled to the lane layout)."""
    w3 = np.asarray(w3, np.float32)
    w5 = np.asarray(w5, np.float32)
    Cout = w3.shape[0]

    def fuse(bias, bn):
        gamma, beta, mean, var = (np.asarray(t, np.float32) for t in bn)
        scale = gamma / np.sqrt(var + _BN_EPS)
        shift = beta + scale * (np.asarray(bias, np.float32) - mean)
        return scale, shift

    sc3, sh3 = fuse(b3, bn3)
    sc5, sh5 = fuse(b5, bn5)
    # Conv accumulator lane layout is w*Cout + co -> tile the per-channel vectors W times.
    sb = np.stack([np.tile(sc3, W), np.tile(sh3, W),
                   np.tile(sc5, W), np.tile(sh5, W)]).astype(np.float32)      # (4, W*Cout)

    b3_band = np.stack([_banded_conv_matrix(w3, kh, W, pad=1) for kh in range(3)])  # (3, W*Cin, W*Cout)
    b5_band = np.stack([_banded_conv_matrix(w5, kh, W, pad=2) for kh in range(5)])  # (5, W*Cin, W*Cout)

    # (W*Cout, Cout) matrix that sums the W groups and applies the 1/(H*W) pooling factor.
    pool = np.tile(np.eye(Cout, dtype=np.float32), (W, 1)) / float(H * W)

    return (jnp.asarray(b3_band), jnp.asarray(b5_band),
            jnp.asarray(sb), jnp.asarray(pool))


# --------------------------------------------------------------------------- #
# Pallas kernel
# --------------------------------------------------------------------------- #
def _make_kernel(H):
    def kernel(x_ref, b3_ref, b5_ref, sb_ref, p_ref, o_ref, xpad_ref):
        # In-kernel zero padding of the row (H) border; the column (W) border is
        # already folded into the banded weight matrices.
        xpad_ref[...] = jnp.zeros_like(xpad_ref)
        xpad_ref[_PAD_S:_PAD_S + H, :] = x_ref[0]

        def branch(b_ref, ksize, pad, sb_row):
            row0 = _PAD_S - pad
            # Conv: one banded MXU matmul per kernel row; first tap initializes acc.
            acc = jnp.dot(xpad_ref[row0:row0 + H, :], b_ref[0],
                          preferred_element_type=jnp.float32)
            for kh in range(1, ksize):
                acc = acc + jnp.dot(xpad_ref[row0 + kh:row0 + kh + H, :], b_ref[kh],
                                    preferred_element_type=jnp.float32)
            # Folded conv-bias + BatchNorm affine + ReLU in the lane-dense (H, W*Cout) layout.
            y = jnp.maximum(acc * sb_ref[sb_row:sb_row + 1, :]
                            + sb_ref[sb_row + 1:sb_row + 2, :], 0.0)
            # Global average pool: fold the W groups via the pool matrix, then sum rows.
            per_ch = jnp.dot(y, p_ref[...], preferred_element_type=jnp.float32)  # (H, Cout)
            return jnp.sum(per_ch, axis=0, keepdims=True)                        # (1, Cout)

        pooled3 = branch(b3_ref, 3, 1, 0)   # branch2: 3x3 conv, pad 1
        pooled5 = branch(b5_ref, 5, 2, 2)   # branch3: 5x5 conv, pad 2
        o_ref[0] = jnp.concatenate([pooled3, pooled5], axis=1).astype(o_ref.dtype)

    return kernel


def object_feature_branch_forward(x, b3_band, b5_band, sb, pool):
    """ObjectFeatureBranch.forward.  x: (N, Cin, H, W) float32 -> (N, 2*Cout, 1, 1)."""
    N, Cin, H, W = x.shape
    Cout = pool.shape[1]
    # Layout plumbing (wrapper glue): NCHW -> (N, H, W*Cin), channels fastest in lanes.
    x2d = jnp.transpose(x, (0, 2, 3, 1)).reshape(N, H, W * Cin)

    out = pl.pallas_call(
        _make_kernel(H),
        out_shape=jax.ShapeDtypeStruct((N, 1, 2 * Cout), jnp.float32),
        grid_spec=pltpu.PrefetchScalarGridSpec(
            num_scalar_prefetch=0,
            grid=(N,),
            in_specs=[
                pl.BlockSpec((1, H, W * Cin), lambda n: (n, 0, 0)),
                pl.BlockSpec((3, W * Cin, W * Cout), lambda n: (0, 0, 0)),
                pl.BlockSpec((5, W * Cin, W * Cout), lambda n: (0, 0, 0)),
                pl.BlockSpec((4, W * Cout), lambda n: (0, 0)),
                pl.BlockSpec((W * Cout, Cout), lambda n: (0, 0)),
            ],
            out_specs=pl.BlockSpec((1, 1, 2 * Cout), lambda n: (n, 0, 0)),
            scratch_shapes=[pltpu.VMEM((H + 2 * _PAD_S, W * Cin), jnp.float32)],
        ),
        compiler_params=pltpu.CompilerParams(
            dimension_semantics=("parallel",)),
    )(x2d, b3_band, b5_band, sb, pool)
    return out.reshape(N, 2 * Cout, 1, 1)


# --------------------------------------------------------------------------- #
# Pure-JAX reference (conv + eval-mode BN + ReLU + concat + global avg pool)
# --------------------------------------------------------------------------- #
def _reference_forward(x, w3, b3, bn3, w5, b5, bn5):
    def branch(w, b, bn, pad):
        gamma, beta, mean, var = bn
        y = jax.lax.conv_general_dilated(
            x, w, window_strides=(1, 1), padding=((pad, pad), (pad, pad)),
            dimension_numbers=("NCHW", "OIHW", "NCHW"),
            precision=jax.lax.Precision.HIGHEST)
        y = y + b[None, :, None, None]
        y = ((y - mean[None, :, None, None])
             * (gamma / jnp.sqrt(var + _BN_EPS))[None, :, None, None]
             + beta[None, :, None, None])
        return jnp.maximum(y, 0.0)

    cat = jnp.concatenate([branch(w3, b3, bn3, 1), branch(w5, b5, bn5, 2)], axis=1)
    return jnp.mean(cat, axis=(2, 3), keepdims=True)


if __name__ == "__main__":
    key = jax.random.PRNGKey(0)
    N, Cin, H, W, Cout = 2, 4, 16, 16, 8
    ks = jax.random.split(key, 13)

    x = jax.random.normal(ks[0], (N, Cin, H, W), dtype=jnp.float32)
    w3 = jax.random.normal(ks[1], (Cout, Cin, 3, 3), dtype=jnp.float32) * 0.2
    b3 = jax.random.normal(ks[2], (Cout,), dtype=jnp.float32) * 0.1
    w5 = jax.random.normal(ks[3], (Cout, Cin, 5, 5), dtype=jnp.float32) * 0.1
    b5 = jax.random.normal(ks[4], (Cout,), dtype=jnp.float32) * 0.1
    bn3 = (1.0 + 0.2 * jax.random.normal(ks[5], (Cout,), dtype=jnp.float32),   # gamma
           0.1 * jax.random.normal(ks[6], (Cout,), dtype=jnp.float32),         # beta
           0.1 * jax.random.normal(ks[7], (Cout,), dtype=jnp.float32),         # running_mean
           0.5 + jax.random.uniform(ks[8], (Cout,), dtype=jnp.float32))        # running_var
    bn5 = (1.0 + 0.2 * jax.random.normal(ks[9], (Cout,), dtype=jnp.float32),
           0.1 * jax.random.normal(ks[10], (Cout,), dtype=jnp.float32),
           0.1 * jax.random.normal(ks[11], (Cout,), dtype=jnp.float32),
           0.5 + jax.random.uniform(ks[12], (Cout,), dtype=jnp.float32))

    b3_band, b5_band, sb, pool = fold_params(w3, b3, bn3, w5, b5, bn5, H, W)

    out = jax.block_until_ready(object_feature_branch_forward(x, b3_band, b5_band, sb, pool))
    ref = jax.block_until_ready(_reference_forward(x, w3, b3, bn3, w5, b5, bn5))

    assert out.shape == (N, 2 * Cout, 1, 1), out.shape
    np.testing.assert_allclose(np.asarray(out), np.asarray(ref), rtol=2e-3, atol=2e-3)

    print("KERNEL_OK")
</pallas_src>

<mosaic_0001>
module attributes {stable_mosaic.version = 11 : i64} {
  func.func @kernel(%arg0: i32, %arg1: memref<1x16x64xf32, #tpu.memory_space<vmem>>, %arg2: memref<3x64x128xf32, #tpu.memory_space<vmem>>, %arg3: memref<5x64x128xf32, #tpu.memory_space<vmem>>, %arg4: memref<4x128xf32, #tpu.memory_space<vmem>>, %arg5: memref<128x8xf32, #tpu.memory_space<vmem>>, %arg6: memref<1x1x16xf32, #tpu.memory_space<vmem>>, %arg7: memref<20x64xf32, #tpu.memory_space<vmem>>) attributes {dimension_semantics = [#tpu.dimension_semantics<parallel>], iteration_bounds = array<i64: 2>, scalar_prefetch = 0 : i64, scratch_operands = 1 : i64, tpu.core_type = #tpu.core_type<tc>, window_params = [{transform_indices = @transform_0, window_bounds = array<i64: 1, 16, 64>}, {pipeline_mode = #tpu.pipeline_mode<synchronous>, transform_indices = @transform_1, window_bounds = array<i64: 3, 64, 128>}, {pipeline_mode = #tpu.pipeline_mode<synchronous>, transform_indices = @transform_2, window_bounds = array<i64: 5, 64, 128>}, {pipeline_mode = #tpu.pipeline_mode<synchronous>, transform_indices = @transform_3, window_bounds = array<i64: 4, 128>}, {pipeline_mode = #tpu.pipeline_mode<synchronous>, transform_indices = @transform_4, window_bounds = array<i64: 128, 8>}, {transform_indices = @transform_5, window_bounds = array<i64: 1, 1, 16>}]} {
    %cst = arith.constant 0.000000e+00 : f32
    %0 = vector.broadcast %cst : f32 to vector<20x64xf32>
    %c0 = arith.constant 0 : index
    %c0_0 = arith.constant 0 : index
    %1 = vector.load %arg7[%c0, %c0_0] : memref<20x64xf32, #tpu.memory_space<vmem>>, vector<20x64xf32>
    tpu.vector_store %arg7[%c0, %c0_0], %0 {strides = array<i32>} : memref<20x64xf32, #tpu.memory_space<vmem>>, vector<20x64xf32>,
    %c0_1 = arith.constant 0 : index
    %c0_2 = arith.constant 0 : index
    %c0_3 = arith.constant 0 : index
    %2 = vector.load %arg1[%c0_1, %c0_2, %c0_3] : memref<1x16x64xf32, #tpu.memory_space<vmem>>, vector<1x16x64xf32>
    %3 = vector.shape_cast %2 : vector<1x16x64xf32> to vector<16x64xf32>
    %c2 = arith.constant 2 : index
    %c0_4 = arith.constant 0 : index
    %4 = vector.load %arg7[%c2, %c0_4] : memref<20x64xf32, #tpu.memory_space<vmem>>, vector<16x64xf32>
    tpu.vector_store %arg7[%c2, %c0_4], %3 {strides = array<i32>} : memref<20x64xf32, #tpu.memory_space<vmem>>, vector<16x64xf32>,
    %c1 = arith.constant 1 : index
    %c0_5 = arith.constant 0 : index
    %5 = vector.load %arg7[%c1, %c0_5] : memref<20x64xf32, #tpu.memory_space<vmem>>, vector<16x64xf32>
    %c0_6 = arith.constant 0 : index
    %c0_7 = arith.constant 0 : index
    %c0_8 = arith.constant 0 : index
    %6 = vector.load %arg2[%c0_6, %c0_7, %c0_8] : memref<3x64x128xf32, #tpu.memory_space<vmem>>, vector<1x64x128xf32>
    %7 = vector.shape_cast %6 : vector<1x64x128xf32> to vector<64x128xf32>
    %cst_9 = arith.constant dense<0.000000e+00> : vector<16x128xf32>
    %8 = tpu.matmul %5, %7, %cst_9 {dimension_numbers = #tpu.dot_dimension_numbers<[1], [0], [0], [1], [0, 0, 1, 1], [], []>} : vector<16x64xf32>, vector<64x128xf32>, vector<16x128xf32> -> vector<16x128xf32>
    %c2_10 = arith.constant 2 : index
    %c0_11 = arith.constant 0 : index
    %9 = vector.load %arg7[%c2_10, %c0_11] : memref<20x64xf32, #tpu.memory_space<vmem>>, vector<16x64xf32>
    %c1_12 = arith.constant 1 : index
    %c0_13 = arith.constant 0 : index
    %c0_14 = arith.constant 0 : index
    %10 = vector.load %arg2[%c1_12, %c0_13, %c0_14] : memref<3x64x128xf32, #tpu.memory_space<vmem>>, vector<1x64x128xf32>
    %11 = vector.shape_cast %10 : vector<1x64x128xf32> to vector<64x128xf32>
    %cst_15 = arith.constant dense<0.000000e+00> : vector<16x128xf32>
    %12 = tpu.matmul %9, %11, %cst_15 {dimension_numbers = #tpu.dot_dimension_numbers<[1], [0], [0], [1], [0, 0, 1, 1], [], []>} : vector<16x64xf32>, vector<64x128xf32>, vector<16x128xf32> -> vector<16x128xf32>
    %13 = arith.addf %8, %12 : vector<16x128xf32>
    %c3 = arith.constant 3 : index
    %c0_16 = arith.constant 0 : index
    %14 = vector.load %arg7[%c3, %c0_16] : memref<20x64xf32, #tpu.memory_space<vmem>>, vector<16x64xf32>
    %c2_17 = arith.constant 2 : index
    %c0_18 = arith.constant 0 : index
    %c0_19 = arith.constant 0 : index
    %15 = vector.load %arg2[%c2_17, %c0_18, %c0_19] : memref<3x64x128xf32, #tpu.memory_space<vmem>>, vector<1x64x128xf32>
    %16 = vector.shape_cast %15 : vector<1x64x128xf32> to vector<64x128xf32>
    %cst_20 = arith.constant dense<0.000000e+00> : vector<16x128xf32>
    %17 = tpu.matmul %14, %16, %cst_20 {dimension_numbers = #tpu.dot_dimension_numbers<[1], [0], [0], [1], [0, 0, 1, 1], [], []>} : vector<16x64xf32>, vector<64x128xf32>, vector<16x128xf32> -> vector<16x128xf32>
    %18 = arith.addf %13, %17 : vector<16x128xf32>
    %c0_21 = arith.constant 0 : index
    %c0_22 = arith.constant 0 : index
    %19 = vector.load %arg4[%c0_21, %c0_22] : memref<4x128xf32, #tpu.memory_space<vmem>>, vector<1x128xf32>
    %20 = vector.broadcast %19 : vector<1x128xf32> to vector<16x128xf32>
    %21 = arith.mulf %18, %20 : vector<16x128xf32>
    %c1_23 = arith.constant 1 : index
    %c0_24 = arith.constant 0 : index
    %22 = vector.load %arg4[%c1_23, %c0_24] : memref<4x128xf32, #tpu.memory_space<vmem>>, vector<1x128xf32>
    %23 = vector.broadcast %22 : vector<1x128xf32> to vector<16x128xf32>
    %24 = arith.addf %21, %23 : vector<16x128xf32>
    %cst_25 = arith.constant 0.000000e+00 : f32
    %25 = vector.broadcast %cst_25 : f32 to vector<16x128xf32>
    %26 = arith.maximumf %24, %25 : vector<16x128xf32>
    %c0_26 = arith.constant 0 : index
    %c0_27 = arith.constant 0 : index
    %27 = vector.load %arg5[%c0_26, %c0_27] : memref<128x8xf32, #tpu.memory_space<vmem>>, vector<128x8xf32>
    %cst_28 = arith.constant dense<0.000000e+00> : vector<16x8xf32>
    %28 = tpu.matmul %26, %27, %cst_28 {dimension_numbers = #tpu.dot_dimension_numbers<[1], [0], [0], [1], [0, 0, 1, 1], [], []>} : vector<16x128xf32>, vector<128x8xf32>, vector<16x8xf32> -> vector<16x8xf32>
    %cst_29 = arith.constant dense<0.000000e+00> : vector<8xf32>
    %29 = vector.multi_reduction <add>, %28, %cst_29 [0] : vector<16x8xf32> to vector<8xf32>
    %30 = vector.shape_cast %29 : vector<8xf32> to vector<1x8xf32>
    %c0_30 = arith.constant 0 : index
    %c0_31 = arith.constant 0 : index
    %31 = vector.load %arg7[%c0_30, %c0_31] : memref<20x64xf32, #tpu.memory_space<vmem>>, vector<16x64xf32>
    %c0_32 = arith.constant 0 : index
    %c0_33 = arith.constant 0 : index
    %c0_34 = arith.constant 0 : index
    %32 = vector.load %arg3[%c0_32, %c0_33, %c0_34] : memref<5x64x128xf32, #tpu.memory_space<vmem>>, vector<1x64x128xf32>
    %33 = vector.shape_cast %32 : vector<1x64x128xf32> to vector<64x128xf32>
    %cst_35 = arith.constant dense<0.000000e+00> : vector<16x128xf32>
    %34 = tpu.matmul %31, %33, %cst_35 {dimension_numbers = #tpu.dot_dimension_numbers<[1], [0], [0], [1], [0, 0, 1, 1], [], []>} : vector<16x64xf32>, vector<64x128xf32>, vector<16x128xf32> -> vector<16x128xf32>
    %c1_36 = arith.constant 1 : index
    %c0_37 = arith.constant 0 : index
    %35 = vector.load %arg7[%c1_36, %c0_37] : memref<20x64xf32, #tpu.memory_space<vmem>>, vector<16x64xf32>
    %c1_38 = arith.constant 1 : index
    %c0_39 = arith.constant 0 : index
    %c0_40 = arith.constant 0 : index
    %36 = vector.load %arg3[%c1_38, %c0_39, %c0_40] : memref<5x64x128xf32, #tpu.memory_space<vmem>>, vector<1x64x128xf32>
    %37 = vector.shape_cast %36 : vector<1x64x128xf32> to vector<64x128xf32>
    %cst_41 = arith.constant dense<0.000000e+00> : vector<16x128xf32>
    %38 = tpu.matmul %35, %37, %cst_41 {dimension_numbers = #tpu.dot_dimension_numbers<[1], [0], [0], [1], [0, 0, 1, 1], [], []>} : vector<16x64xf32>, vector<64x128xf32>, vector<16x128xf32> -> vector<16x128xf32>
    %39 = arith.addf %34, %38 : vector<16x128xf32>
    %c2_42 = arith.constant 2 : index
    %c0_43 = arith.constant 0 : index
    %40 = vector.load %arg7[%c2_42, %c0_43] : memref<20x64xf32, #tpu.memory_space<vmem>>, vector<16x64xf32>
    %c2_44 = arith.constant 2 : index
    %c0_45 = arith.constant 0 : index
    %c0_46 = arith.constant 0 : index
    %41 = vector.load %arg3[%c2_44, %c0_45, %c0_46] : memref<5x64x128xf32, #tpu.memory_space<vmem>>, vector<1x64x128xf32>
    %42 = vector.shape_cast %41 : vector<1x64x128xf32> to vector<64x128xf32>
    %cst_47 = arith.constant dense<0.000000e+00> : vector<16x128xf32>
    %43 = tpu.matmul %40, %42, %cst_47 {dimension_numbers = #tpu.dot_dimension_numbers<[1], [0], [0], [1], [0, 0, 1, 1], [], []>} : vector<16x64xf32>, vector<64x128xf32>, vector<16x128xf32> -> vector<16x128xf32>
    %44 = arith.addf %39, %43 : vector<16x128xf32>
    %c3_48 = arith.constant 3 : index
    %c0_49 = arith.constant 0 : index
    %45 = vector.load %arg7[%c3_48, %c0_49] : memref<20x64xf32, #tpu.memory_space<vmem>>, vector<16x64xf32>
    %c3_50 = arith.constant 3 : index
    %c0_51 = arith.constant 0 : index
    %c0_52 = arith.constant 0 : index
    %46 = vector.load %arg3[%c3_50, %c0_51, %c0_52] : memref<5x64x128xf32, #tpu.memory_space<vmem>>, vector<1x64x128xf32>
    %47 = vector.shape_cast %46 : vector<1x64x128xf32> to vector<64x128xf32>
    %cst_53 = arith.constant dense<0.000000e+00> : vector<16x128xf32>
    %48 = tpu.matmul %45, %47, %cst_53 {dimension_numbers = #tpu.dot_dimension_numbers<[1], [0], [0], [1], [0, 0, 1, 1], [], []>} : vector<16x64xf32>, vector<64x128xf32>, vector<16x128xf32> -> vector<16x128xf32>
    %49 = arith.addf %44, %48 : vector<16x128xf32>
    %c4 = arith.constant 4 : index
    %c0_54 = arith.constant 0 : index
    %50 = vector.load %arg7[%c4, %c0_54] : memref<20x64xf32, #tpu.memory_space<vmem>>, vector<16x64xf32>
    %c4_55 = arith.constant 4 : index
    %c0_56 = arith.constant 0 : index
    %c0_57 = arith.constant 0 : index
    %51 = vector.load %arg3[%c4_55, %c0_56, %c0_57] : memref<5x64x128xf32, #tpu.memory_space<vmem>>, vector<1x64x128xf32>
    %52 = vector.shape_cast %51 : vector<1x64x128xf32> to vector<64x128xf32>
    %cst_58 = arith.constant dense<0.000000e+00> : vector<16x128xf32>
    %53 = tpu.matmul %50, %52, %cst_58 {dimension_numbers = #tpu.dot_dimension_numbers<[1], [0], [0], [1], [0, 0, 1, 1], [], []>} : vector<16x64xf32>, vector<64x128xf32>, vector<16x128xf32> -> vector<16x128xf32>
    %54 = arith.addf %49, %53 : vector<16x128xf32>
    %c2_59 = arith.constant 2 : index
    %c0_60 = arith.constant 0 : index
    %55 = vector.load %arg4[%c2_59, %c0_60] : memref<4x128xf32, #tpu.memory_space<vmem>>, vector<1x128xf32>
    %56 = vector.broadcast %55 : vector<1x128xf32> to vector<16x128xf32>
    %57 = arith.mulf %54, %56 : vector<16x128xf32>
    %c3_61 = arith.constant 3 : index
    %c0_62 = arith.constant 0 : index
    %58 = vector.load %arg4[%c3_61, %c0_62] : memref<4x128xf32, #tpu.memory_space<vmem>>, vector<1x128xf32>
    %59 = vector.broadcast %58 : vector<1x128xf32> to vector<16x128xf32>
    %60 = arith.addf %57, %59 : vector<16x128xf32>
    %cst_63 = arith.constant 0.000000e+00 : f32
    %61 = vector.broadcast %cst_63 : f32 to vector<16x128xf32>
    %62 = arith.maximumf %60, %61 : vector<16x128xf32>
    %c0_64 = arith.constant 0 : index
    %c0_65 = arith.constant 0 : index
    %63 = vector.load %arg5[%c0_64, %c0_65] : memref<128x8xf32, #tpu.memory_space<vmem>>, vector<128x8xf32>
    %cst_66 = arith.constant dense<0.000000e+00> : vector<16x8xf32>
    %64 = tpu.matmul %62, %63, %cst_66 {dimension_numbers = #tpu.dot_dimension_numbers<[1], [0], [0], [1], [0, 0, 1, 1], [], []>} : vector<16x128xf32>, vector<128x8xf32>, vector<16x8xf32> -> vector<16x8xf32>
    %cst_67 = arith.constant dense<0.000000e+00> : vector<8xf32>
    %65 = vector.multi_reduction <add>, %64, %cst_67 [0] : vector<16x8xf32> to vector<8xf32>
    %66 = vector.shape_cast %65 : vector<8xf32> to vector<1x8xf32>
    %67 = tpu.concatenate %30, %66 in 1 : vector<1x8xf32>, vector<1x8xf32> -> vector<1x16xf32>
    %c0_68 = arith.constant 0 : index
    %c0_69 = arith.constant 0 : index
    %c0_70 = arith.constant 0 : index
    %68 = vector.load %arg6[%c0_68, %c0_69, %c0_70] : memref<1x1x16xf32, #tpu.memory_space<vmem>>, vector<1x1x16xf32>
    %69 = vector.shape_cast %68 : vector<1x1x16xf32> to vector<1x16xf32>
    %70 = vector.shape_cast %67 : vector<1x16xf32> to vector<1x1x16xf32>
    tpu.vector_store %arg6[%c0_68, %c0_69, %c0_70], %70 {strides = array<i32>} : memref<1x1x16xf32, #tpu.memory_space<vmem>>, vector<1x1x16xf32>,
    return
  }
  func.func @transform_0(%arg0: i32) -> (i32, i32, i32) {
    %c0_i32 = arith.constant 0 : i32
    %c0_i32_0 = arith.constant 0 : i32
    %c0_i32_1 = arith.constant 0 : i32
    return %arg0, %c0_i32, %c0_i32_0 : i32, i32, i32
  }
  func.func @transform_1(%arg0: i32) -> (i32, i32, i32) {
    %c0_i32 = arith.constant 0 : i32
    %c0_i32_0 = arith.constant 0 : i32
    %c0_i32_1 = arith.constant 0 : i32
    %c0_i32_2 = arith.constant 0 : i32
    return %c0_i32, %c0_i32_0, %c0_i32_1 : i32, i32, i32
  }
  func.func @transform_2(%arg0: i32) -> (i32, i32, i32) {
    %c0_i32 = arith.constant 0 : i32
    %c0_i32_0 = arith.constant 0 : i32
    %c0_i32_1 = arith.constant 0 : i32
    %c0_i32_2 = arith.constant 0 : i32
    return %c0_i32, %c0_i32_0, %c0_i32_1 : i32, i32, i32
  }
  func.func @transform_3(%arg0: i32) -> (i32, i32) {
    %c0_i32 = arith.constant 0 : i32
    %c0_i32_0 = arith.constant 0 : i32
    %c0_i32_1 = arith.constant 0 : i32
    return %c0_i32, %c0_i32_0 : i32, i32
  }
  func.func @transform_4(%arg0: i32) -> (i32, i32) {
    %c0_i32 = arith.constant 0 : i32
    %c0_i32_0 = arith.constant 0 : i32
    %c0_i32_1 = arith.constant 0 : i32
    return %c0_i32, %c0_i32_0 : i32, i32
  }
  func.func @transform_5(%arg0: i32) -> (i32, i32, i32) {
    %c0_i32 = arith.constant 0 : i32
    %c0_i32_0 = arith.constant 0 : i32
    %c0_i32_1 = arith.constant 0 : i32
    return %arg0, %c0_i32, %c0_i32_0 : i32, i32, i32
  }
}

</mosaic_0001>

<bundles_post_ra>
// kernel: tpu_custom_call.1
= control target key start
LH: loop header
LB: loop body
LE: loop exit
PB: predicated region body
PF: predicated region fallthrough
CT: control target
= control target key end

     0   :  { %10 = vsyncpa [#allocation4], 0  ;;  %s2223_s0 = inlined_call_operand.vmem [shape: f32[2,16,64], index: 0, kind: input, shape index: {}]   ;;  %s2224_s1 = inlined_call_operand.hbm [shape: f32[3,64,128], index: 1, kind: input, shape index: {}]   ;;  %s2225_s2 = inlined_call_operand.hbm [shape: f32[5,64,128], index: 2, kind: input, shape index: {}]   ;;  %s2226_s3 = inlined_call_operand.vmem [shape: f32[4,128], index: 3, kind: input, shape index: {}]   ;;  %s2227_s4 = inlined_call_operand.vmem [shape: f32[128,8], index: 4, kind: input, shape index: {}]   ;;  %s2228_s5 = inlined_call_operand.hbm [shape: f32[2,1,16], index: 5, kind: output, shape index: {}]  }
   0x1   :  { %11 = vsyncpa [#allocation7], 0 }
   0x2   :  { %12 = vsyncpa [#allocation5], 0 }
   0x3   :  { %14 = vsyncpa [#allocation5 + $0x1], 0  ;;  %s1888_s18 = smov 0   ;;  %s1890_s19 = smov 0  }
   0x4   :  { %s1892_s20 = smov 0   ;;  %s1894_s21 = smov 0  }
   0x5 LB: > { %s1909_s22 = sadd.s32 4294967295, %s1849_s21   ;;  %s1293_s23 = sadd.s32 4294967294, %s1849_s21   ;;  %s1849_s21 = sphi %s1894_s21, %s2242_s21   ;;  %s1845_s20 = sphi %s1892_s20, %s2241_s20   ;;  %s1841_s19 = sphi %s1890_s19, %s2240_s19   ;;  %s1837_s18 = sphi %s1888_s18, %s2239_s18  }
   0x6   : > { %s1913_s24 = sadd.s32 1, %s1849_s21   ;;  %s137_s25 = sadd.s32 1, %s1845_s20 }
   0x7   : > { %s134_s26 = ssub.s32 %s1849_s21, %s1913_s24  ;;  %p147_p0 = scmp.ne.s32.totalorder %s1845_s20, %s1841_s19 }
   0x8   : > { %p135_p1 = scmp.eq.s32.totalorder %s134_s26, 0  ;;  %p148_p2 = scmp.eq.s32.totalorder %s1909_s22, 1 }
   0x9   : > { %p153_p3 = scmp.ne.s32.totalorder %s1841_s19, %s1837_s18  ;;  %p154_p4 = scmp.eq.s32.totalorder %s1293_s23, 1 }
   0xa   : > { %s1924_s27 = scalar_select %p135_p1, %s1845_s20, %s137_s25  }
   0xb   : > { %p1926_p5 = por %p148_p2, %p147_p0  ;;  %p1930_p6 = por %p154_p4, %p153_p3 }
   0xc   : > { %p1294_p7 = scmp.ge.s32.totalorder %s1849_s21, 1  ;;  %p161_p8 = scmp.lt.s32.totalorder %s1849_s21, 3 }
   0xd   : > { %s2231_s29 = scalar_select %p1930_p6, 1, 0 }
   0xe   : > { %p2229_p9 = scmp.eq.s32.totalorder %s1909_s22, 0  ;;  %p1937_p10 = pnand %p1294_p7, %p161_p8 }
   0xf   : > { %s1851_s6 = smov [#allocation3]   ;;  %s1852_s9 = smov [#allocation6]  }
  0x10   : > { %s173_s7 = sshll.u32 %s1851_s6, 4  ;;  %p1675_p11 = pneg %p1937_p10  ;;  %s174_s7 = int_to_ptr.vmem [resolvable:$true] %s173_s7 }
  0x11   : > { %s186_s10 = sshll.u32 %s1852_s9, 4  ;;  %s1740_s11 = scalar_lea.vmem %s174_s7, 3072  ;;  %s187_s10 = int_to_ptr.vmem [resolvable:$true] %s186_s10 }
  0x12   : > { %p1945_p12 = pnand %p2229_p9, %p1675_p11  ;;  %p1741_p0 = scmp.ne.s32.totalorder %s174_s7, %s1740_s11 }
  0x13   : > { %p1748_p3 = scmp.lt.s32.totalorder %s174_s7, %s174_s7  ;;  %p1749_p4 = scmp.lt.s32.totalorder %s1740_s11, %s1740_s11 }
  0x14   : > { %p1731_p13 = pneg %p1945_p12 }
  0x15   : > { %p1750_p7 = por %p1749_p4, %p1748_p3 }
  0x16   : > { %p1743_p1 = pnand %p1741_p0, %p1731_p13 }
  0x18   : > { %p1744_p2 = pneg %p1743_p1 }
  0x1a   : > { %p1751_p8 = pnand %p1750_p7, %p1744_p2 }
  0x1c   : > { %1754 = shalt.err (!%p1751_p8)
}
  0x1d   : > { %s1853_s12 = smov 128   ;;  %s1854_s13 = smov 8  }
  0x1e   : > { %1678 = dma.hbm_to_vmem [thread:$0]  (!%p1945_p12), %s2224_s1, 3072, %s174_s7, [#allocation4], %s1853_s12, %s1853_s12, %s1854_s13  }
  0x1f   : > { %s1766_s16 = scalar_lea.vmem %s187_s10, 5120  ;;  %p1774_p9 = scmp.lt.s32.totalorder %s187_s10, %s187_s10 }
  0x20   : > { %p1767_p11 = scmp.ne.s32.totalorder %s187_s10, %s1766_s16  ;;  %p1775_p6 = scmp.lt.s32.totalorder %s1766_s16, %s1766_s16 }
  0x22   : > { %p1769_p0 = pnand %p1767_p11, %p1731_p13  ;;  %p1776_p3 = por %p1775_p6, %p1774_p9 }
  0x24   : > { %p1770_p1 = pneg %p1769_p0 }
  0x26   : > { %p1777_p2 = pnand %p1776_p3, %p1770_p1 }
  0x28   : > { %1780 = shalt.err (!%p1777_p2)
}
  0x29   : > { %1681 = dma.hbm_to_vmem [thread:$0]  (!%p1945_p12), %s2225_s2, 5120, %s187_s10, [#allocation7], %s1853_s12, %s1853_s12, %s1854_s13  }
  0x2a   : > { %216 = sbr.rel (%p1937_p10) target bundleno = 865 (0x361), region = 40  ;;  %p2234_p4 = scmp.eq.s32.totalorder (!%p1937_p10), %s1909_s22, 0 }
  0x2f   : > { %1824 = dma.done.wait (%p2234_p4), [#allocation4], 3072   ;;  %p2235_p13 = pmov %p2234_p4 }
  0x30   : > { %p2236_p7 = pmov %p2234_p4 }
  0x31   : > { %1826 = vsyncadd (%p2235_p13), [#allocation4], 4294964224 }
  0x32   : > { %1828 = dma.done.wait (%p2236_p7), [#allocation7], 5120   ;;  %p2237_p6 = pmov %p2234_p4 }
  0x33   : > { %p247_p9 = scmp.lt.s32.totalorder %s1909_s22, 1  ;;  %vm252_vm0 = vcmask 523264   ;;  %vm255_vm1 = vcmask 519168   ;;  %v1855_v0 = vmov 0.0   ;;  %v281_v1 = vld [vmem:[#allocation3 + $0x78] sm:$0xff]  ;;  %v280_v2 = vld [vmem:[#allocation3 + $0x70] sm:$0xff] }
  0x34   : > { %1830 = vsyncadd (%p2237_p6), [#allocation7], 4294962176  ;;  %253 = vst.msk [vmem:[#allocation2] sm:$0xff] %vm252_vm0, %v1855_v0  ;;  %1443 = vmatprep.subr.mxu1 %v281_v1  ;;  %v279_v3 = vld [vmem:[#allocation3 + $0x68] sm:$0xff]  ;;  %v454_v6 = vld [vmem:[#allocation3 + $0xb8] sm:$0xff]  ;;  %vm645_vm2 = vcmask 64512  }
  0x35   : > { %254 = vst.msk [vmem:[#allocation2 + $0x8] sm:$0xff] %vm252_vm0, %v1855_v0  ;;  %s248_s25 = scalar_select %p247_p9, %s1909_s22, 1  ;;  %1444 = vmatpush3.msra.mxu1 %v281_v1  ;;  %v278_v7 = vld [vmem:[#allocation3 + $0x60] sm:$0xff]  ;;  %1481 = vmatprep.subr.mxu0 %v454_v6  ;;  %v453_v8 = vld [vmem:[#allocation3 + $0xb0] sm:$0xff]  ;;  %v452_v9 = vld [vmem:[#allocation3 + $0xa8] sm:$0xff]  ;;  %vm1201_vm3 = vcmask 122880  }
  0x36   : > { %256 = vst.msk [vmem:[#allocation2 + $0x10] sm:$0xf] %vm255_vm1, %v1855_v0  ;;  %1445 = vmatprep.subr.mxu1 %v280_v2  ;;  %1482 = vmatpush3.msra.mxu0 %v454_v6  ;;  %v277_v10 = vld [vmem:[#allocation3 + $0x58] sm:$0xff]  ;;  %v451_v11 = vld [vmem:[#allocation3 + $0xa0] sm:$0xff]  ;;  %v276_v12 = vld [vmem:[#allocation3 + $0x50] sm:$0xff]  ;;  %s1856_s16 = smov 8  }
  0x37   : > { %s1326_s26 = sshll.u32 %s248_s25, 4  ;;  %1446 = vmatpush3.msra.mxu1 %v280_v2  ;;  %1483 = vmatprep.subr.mxu0 %v453_v8  ;;  %v275_v13 = vld [vmem:[#allocation3 + $0x48] sm:$0xff]  ;;  %v450_v15 = vld [vmem:[#allocation3 + $0x98] sm:$0xff]  ;;  %v274_v16 = vld [vmem:[#allocation3 + $0x40] sm:$0xff]  ;;  %s245_s17 = sand.u32 1, %s1841_s19  }
  0x38   : > { %s251_s7 = scalar_lea.vmem %s2223_s0, %s1326_s26  ;;  %1447 = vmatprep.subr.mxu1 %v279_v3  ;;  %1484 = vmatpush3.msra.mxu0 %v453_v8  ;;  %v449_v17 = vld [vmem:[#allocation3 + $0x90] sm:$0xff]  ;;  %v270_v19 = vld [vmem:[#allocation3 + $0x38] sm:$0xff]  ;;  %v448_v20 = vld [vmem:[#allocation3 + $0x88] sm:$0xff]  ;;  %s1323_s23 = sshll.u32 %s1909_s22, 4 }
  0x39   : > { %v257_v4 = vld [vmem:[%s251_s7] sm:$0xff]  ;;  %v258_v5 = vld [vmem:[%s251_s7 + $0x8] sm:$0xff]  ;;  %1448 = vmatpush3.msra.mxu1 %v279_v3  ;;  %1485 = vmatprep.subr.mxu0 %v452_v9  ;;  %v447_v22 = vld [vmem:[#allocation3 + $0x80] sm:$0xff]  ;;  %s246_s25 = scalar_lea.vmem [#allocation8], %s245_s17  ;;  %s2187_s7 = scalar_lea.hbm %s2228_s5, %s1323_s23 }
  0x3a   : > { %259 = vst.msk [vmem:[#allocation2 + $0x2] sm:$0xff] %vm252_vm0, %v257_v4  ;;  %260 = vst.msk [vmem:[#allocation2 + $0xa] sm:$0xff] %vm252_vm0, %v258_v5  ;;  %1449 = vmatprep.subr.mxu1 %v278_v7  ;;  %1486 = vmatpush3.msra.mxu0 %v452_v9  ;;  %v269_v21 = vld [vmem:[#allocation3 + $0x30] sm:$0xff]  ;;  %v268_v23 = vld [vmem:[#allocation3 + $0x28] sm:$0xff]  ;;  %s1216_s26 = sshll.u32 %s246_s25, 4  ;;  %s1204_s8 = scalar_lea.sflag [#allocation5], %s245_s17  ;;  %s1217_s26 = int_to_ptr.vmem [resolvable:$true] %s1216_s26 }
  0x3b   : > { %1450 = vmatpush3.msra.mxu1 %v278_v7  ;;  %1487 = vmatprep.subr.mxu0 %v451_v11  ;;  %v267_v25 = vld [vmem:[#allocation3 + $0x20] sm:$0xff]  ;;  %v266_v28 = vld [vmem:[#allocation3 + $0x18] sm:$0xff]  ;;  %v265_v30 = vld [vmem:[#allocation3 + $0x10] sm:$0xff]  ;;  %s1781_s9 = scalar_lea.vmem %s1217_s26, 16  ;;  %s1857_s22 = smov [#allocation8]  }
  0x3c   : > { %1451 = vmatprep.subr.mxu1 %v277_v10  ;;  %1488 = vmatpush3.msra.mxu0 %v451_v11  ;;  %v673_v29 = vld [vmem:[#allocation6 + $0x78] sm:$0xff]  ;;  %v672_v31 = vld [vmem:[#allocation6 + $0x70] sm:$0xff]  ;;  %v264_v32 = vld [vmem:[#allocation3 + $0x8] sm:$0xff]  ;;  %p1782_p10 = scmp.ne.s32.totalorder %s1217_s26, %s1781_s9  ;;  %s1785_s10 = sshll.u32 %s1857_s22, 4  ;;  %s1786_s10 = int_to_ptr.vmem [resolvable:$false] %s1785_s10 }
  0x3d   : > { %1452 = vmatpush3.msra.mxu1 %v277_v10  ;;  %1489 = vmatprep.subr.mxu0 %v450_v15  ;;  %v671_v33 = vld [vmem:[#allocation6 + $0x68] sm:$0xff]  ;;  %v263_v34 = vld [vmem:[#allocation3] sm:$0xff]  ;;  %v2012_v37 = vld [vmem:[%s2227_s4 + $0x70] sm:$0xff]  ;;  %s1787_s11 = scalar_lea.vmem %s1786_s10, 32  ;;  %p1788_p11 = scmp.lt.s32.totalorder %s1217_s26, %s1786_s10 }
  0x3e   : > { %1453 = vmatprep.subr.mxu1 %v276_v12  ;;  %1490 = vmatpush3.msra.mxu0 %v450_v15  ;;  %v2006_v36 = vld [vmem:[%s2227_s4 + $0x78] sm:$0xff]  ;;  %v2022_v39 = vld [vmem:[%s2227_s4 + $0x68] sm:$0xff]  ;;  %v669_v40 = vld [vmem:[#allocation6 + $0x58] sm:$0xff]  ;;  %p1783_p12 = pnand %p1782_p10, %p1926_p5  ;;  %p1789_p0 = scmp.lt.s32.totalorder %s1787_s11, %s1781_s9 }
  0x3f   : > { %1454 = vmatpush3.msra.mxu1 %v276_v12  ;;  %1491 = vmatprep.subr.mxu0 %v449_v17  ;;  %v670_v38 = vld [vmem:[#allocation6 + $0x60] sm:$0xff]  ;;  %v2029_v41 = vld [vmem:[%s2227_s4 + $0x60] sm:$0xff]  ;;  %v668_v42 = vld [vmem:[#allocation6 + $0x50] sm:$0xff] }
  0x40   : > { %1455 = vmatprep.subr.mxu1 %v275_v13  ;;  %1492 = vmatpush3.msra.mxu0 %v449_v17  ;;  %v2034_v43 = vld [vmem:[%s2227_s4 + $0x58] sm:$0xff]  ;;  %v667_v44 = vld [vmem:[#allocation6 + $0x48] sm:$0xff]  ;;  %v2041_v45 = vld [vmem:[%s2227_s4 + $0x50] sm:$0xff]  ;;  %p1784_p8 = pneg %p1783_p12  ;;  %p1790_p1 = por %p1789_p0, %p1788_p11 }
  0x41   : > { %v1986_v14 = vld [vmem:[#allocation2 + $0x2] sm:$0xff]  ;;  %1456 = vmatpush3.msra.mxu1 %v275_v13  ;;  %v1990_v18 = vld [vmem:[#allocation2 + $0xa] sm:$0xff]  ;;  %1493 = vmatprep.subr.mxu0 %v448_v20  ;;  %v666_v46 = vld [vmem:[#allocation6 + $0x40] sm:$0xff] }
  0x42   : > { %1459 = vmatprep.mubr.msk.f32.mxu1 %vm252_vm0, %v1986_v14  ;;  %1457 = vmatprep.subr.mxu1 %v274_v16  ;;  %v261_v24 = vld [vmem:[#allocation2 + $0x1] sm:$0xff]  ;;  %v1997_v27 = vld [vmem:[#allocation2 + $0xb] sm:$0xff]  ;;  %v2062_v51 = vld [vmem:[%s2227_s4 + $0x38] sm:$0xff]  ;;  %p1791_p3 = pnand %p1790_p1, %p1784_p8 }
  0x43   : > { %1458 = vmatpush3.msra.mxu1 %v274_v16  ;;  %1494 = vmatpush3.msra.mxu0 %v448_v20  ;;  %v1994_v26 = vld [vmem:[#allocation2 + $0x3] sm:$0xff]  ;;  %v664_v48 = vld [vmem:[#allocation6 + $0x38] sm:$0xff]  ;;  %v661_v54 = vld [vmem:[#allocation6 + $0x20] sm:$0xff] }
  0x44   : > { %1460 = vmatmul.mubr.msk.f32.vlgmr.msra.gmra.mxu1 %vm252_vm0, %v1990_v18  ;;  %1462 = vmatprep.subr.mxu1 %v270_v19  ;;  %v262_v35 = vld [vmem:[#allocation2 + $0x9] sm:$0xff]  ;;  %v2055_v49 = vld [vmem:[%s2227_s4 + $0x40] sm:$0xff]  ;;  %v2093_v59 = vld [vmem:[%s2227_s4 + $0x18] sm:$0xff] }
  0x45   : > { %1463 = vmatpush3.msra.mxu1 %v270_v19  ;;  %1495 = vmatprep.subr.mxu0 %v447_v22  ;;  %v2048_v47 = vld [vmem:[%s2227_s4 + $0x48] sm:$0xff]  ;;  %v662_v52 = vld [vmem:[#allocation6 + $0x28] sm:$0xff]  ;;  %v2070_v53 = vld [vmem:[%s2227_s4 + $0x30] sm:$0xff] }
  0x46   : > { %1464 = vmatprep.subr.mxu1 %v269_v21  ;;  %1478 = vmatprep.mubr.msk.f32.mxu1 %vm252_vm0, %v261_v24  ;;  %v663_v50 = vld [vmem:[#allocation6 + $0x30] sm:$0xff]  ;;  %v660_v56 = vld [vmem:[#allocation6 + $0x18] sm:$0xff]  ;;  %v2086_v57 = vld [vmem:[%s2227_s4 + $0x20] sm:$0xff] }
  0x47   : > { %1465 = vmatpush3.msra.mxu1 %v269_v21  ;;  %1496 = vmatpush3.msra.mxu0 %v447_v22  ;;  %v2079_v55 = vld [vmem:[%s2227_s4 + $0x28] sm:$0xff]  ;;  %v658_v60 = vld [vmem:[#allocation6 + $0x8] sm:$0xff]  ;;  %v2100_v61 = vld [vmem:[%s2227_s4 + $0x10] sm:$0xff] }
  0x48   : > { %1466 = vmatprep.subr.mxu1 %v268_v23  ;;  %1497 = vmatprep.mubr.msk.f32.mxu0 %vm252_vm0, %v1994_v26  ;;  %v659_v58 = vld [vmem:[#allocation6 + $0x10] sm:$0xff]  ;;  %v657_v62 = vld [vmem:[#allocation6] sm:$0xff]  ;;  %v655_v0 = vld [vmem:[#allocation2] sm:$0xff] }
  0x49   : > { %1467 = vmatpush3.msra.mxu1 %v268_v23  ;;  %1498 = vmatmul.mubr.msk.f32.vlgmr.msra.gmra.mxu0 %vm252_vm0, %v1997_v27  ;;  %v2107_v63 = vld [vmem:[%s2227_s4 + $0x8] sm:$0xff]  ;;  %v2113_v2 = vld [vmem:[%s2227_s4] sm:$0xff]  ;;  %v2119_v3 = vld [vmem:[#allocation6 + $0xb8] sm:$0xff] }
  0x4a   : > { %1468 = vmatprep.subr.mxu1 %v267_v25  ;;  %1535 = vmatprep.subr.mxu0 %v673_v29  ;;  %v656_v1 = vld [vmem:[#allocation2 + $0x8] sm:$0xff]  ;;  %v924_v4 = vld [vmem:[#allocation6 + $0xf8] sm:$0xff]  ;;  %v922_v6 = vld [vmem:[#allocation6 + $0xe8] sm:$0xff] }
  0x4b   : > { %1469 = vmatpush3.msra.mxu1 %v267_v25  ;;  %1536 = vmatpush3.msra.mxu0 %v673_v29  ;;  %v923_v5 = vld [vmem:[#allocation6 + $0xf0] sm:$0xff]  ;;  %v921_v7 = vld [vmem:[#allocation6 + $0xe0] sm:$0xff]  ;;  %v920_v8 = vld [vmem:[#allocation6 + $0xd8] sm:$0xff] }
  0x4c   : > { %1470 = vmatprep.subr.mxu1 %v266_v28  ;;  %1537 = vmatprep.subr.mxu0 %v672_v31  ;;  %v919_v9 = vld [vmem:[#allocation6 + $0xd0] sm:$0xff]  ;;  %v918_v10 = vld [vmem:[#allocation6 + $0xc8] sm:$0xff]  ;;  %v917_v11 = vld [vmem:[#allocation6 + $0xc0] sm:$0xff] }
  0x4d   : > { %1471 = vmatpush3.msra.mxu1 %v266_v28  ;;  %1538 = vmatpush3.msra.mxu0 %v672_v31  ;;  %v1309_v19 = vld [vmem:[%s2226_s3] ss:$0 sm:$0xff]  ;;  %v1310_v25 = vld [vmem:[%s2226_s3 + $0x1] ss:$0 sm:$0xff] }
  0x4e   : > { %1472 = vmatprep.subr.mxu1 %v265_v30  ;;  %1539 = vmatprep.subr.mxu0 %v671_v33 }
  0x4f   : > { %1473 = vmatpush3.msra.mxu1 %v265_v30  ;;  %1540 = vmatpush3.msra.mxu0 %v671_v33  ;;  %v836_v33 = vld [vmem:[#allocation6 + $0xa8] sm:$0xff] }
  0x50   : > { %1474 = vmatprep.subr.mxu1 %v264_v32  ;;  %1551 = vmatprep.mubr.msk.f32.mxu0 %vm252_vm0, %v261_v24 }
  0x51   : > { %1475 = vmatpush3.msra.mxu1 %v264_v32  ;;  %1541 = vmatprep.subr.mxu0 %v670_v38  ;;  %v837_v32 = vld [vmem:[#allocation6 + $0xb0] sm:$0xff] }
  0x52   : > { %1476 = vmatprep.subr.mxu1 %v263_v34  ;;  %1542 = vmatpush3.msra.mxu0 %v670_v38  ;;  %v831_v38 = vld [vmem:[#allocation6 + $0x80] sm:$0xff] }
  0x53   : > { %1477 = vmatpush3.msra.mxu1 %v263_v34  ;;  %1543 = vmatprep.subr.mxu0 %v669_v40  ;;  %v835_v34 = vld [vmem:[#allocation6 + $0xa0] sm:$0xff] }
  0x54   : > { %1479 = vmatmul.mubr.msk.f32.vlgmr.msra.gmra.mxu1 %vm252_vm0, %v262_v35  ;;  %1500 = vmatprep.subr.mxu1 %v2006_v36 }
  0x55   : > { %1501 = vmatpush3.msra.mxu1 %v2006_v36  ;;  %1544 = vmatpush3.msra.mxu0 %v669_v40  ;;  %v1011_v40 = vld [vmem:[#allocation6 + $0x130] sm:$0xff] }
  0x56   : > { %1502 = vmatprep.subr.mxu1 %v2012_v37  ;;  %1545 = vmatprep.subr.mxu0 %v668_v42 }
  0x57   : > { %1503 = vmatpush3.msra.mxu1 %v2012_v37  ;;  %1546 = vmatpush3.msra.mxu0 %v668_v42  ;;  %v1009_v42 = vld [vmem:[#allocation6 + $0x120] sm:$0xff] }
  0x58   : > { %1504 = vmatprep.subr.mxu1 %v2022_v39  ;;  %1547 = vmatprep.subr.mxu0 %v667_v44 }
  0x59   : > { %1505 = vmatpush3.msra.mxu1 %v2022_v39  ;;  %1548 = vmatpush3.msra.mxu0 %v667_v44  ;;  %v1007_v44 = vld [vmem:[#allocation6 + $0x110] sm:$0xff] }
  0x5a   : > { %1506 = vmatprep.subr.mxu1 %v2029_v41  ;;  %1549 = vmatprep.subr.mxu0 %v666_v46 }
  0x5b   : > { %1507 = vmatpush3.msra.mxu1 %v2029_v41  ;;  %1550 = vmatpush3.msra.mxu0 %v666_v46  ;;  %v1003_v46 = vld [vmem:[#allocation2 + $0xc] sm:$0xff] }
  0x5c   : > { %1508 = vmatprep.subr.mxu1 %v2034_v43  ;;  %1554 = vmatprep.subr.mxu0 %v664_v48 }
  0x5d   : > { %1509 = vmatpush3.msra.mxu1 %v2034_v43  ;;  %1552 = vmatmul.mubr.msk.f32.vlgmr.msra.gmra.mxu0 %vm252_vm0, %v262_v35  ;;  %v834_v35 = vld [vmem:[#allocation6 + $0x98] sm:$0xff] }
  0x5e   : > { %1510 = vmatprep.subr.mxu1 %v2041_v45  ;;  %1555 = vmatpush3.msra.mxu0 %v664_v48 }
  0x5f   : > { %1511 = vmatpush3.msra.mxu1 %v2041_v45  ;;  %1556 = vmatprep.subr.mxu0 %v663_v50 }
  0x60   : > { %1512 = vmatprep.subr.mxu1 %v2048_v47  ;;  %1557 = vmatpush3.msra.mxu0 %v663_v50 }
  0x61   : > { %1513 = vmatpush3.msra.mxu1 %v2048_v47  ;;  %1558 = vmatprep.subr.mxu0 %v662_v52 }
  0x62   : > { %1514 = vmatprep.subr.mxu1 %v2055_v49  ;;  %1559 = vmatpush3.msra.mxu0 %v662_v52 }
  0x63   : > { %1515 = vmatpush3.msra.mxu1 %v2055_v49  ;;  %1560 = vmatprep.subr.mxu0 %v661_v54 }
  0x64   : > { %1516 = vmatprep.subr.mxu1 %v2062_v51  ;;  %1561 = vmatpush3.msra.mxu0 %v661_v54 }
  0x65   : > { %1517 = vmatpush3.msra.mxu1 %v2062_v51  ;;  %1562 = vmatprep.subr.mxu0 %v660_v56 }
  0x66   : > { %1518 = vmatprep.subr.mxu1 %v2070_v53  ;;  %1563 = vmatpush3.msra.mxu0 %v660_v56 }
  0x67   : > { %1519 = vmatpush3.msra.mxu1 %v2070_v53  ;;  %1564 = vmatprep.subr.mxu0 %v659_v58 }
  0x68   : > { %1520 = vmatprep.subr.mxu1 %v2079_v55  ;;  %1565 = vmatpush3.msra.mxu0 %v659_v58 }
  0x69   : > { %1521 = vmatpush3.msra.mxu1 %v2079_v55  ;;  %1566 = vmatprep.subr.mxu0 %v658_v60 }
  0x6a   : > { %1522 = vmatprep.subr.mxu1 %v2086_v57  ;;  %1567 = vmatpush3.msra.mxu0 %v658_v60 }
  0x6b   : > { %1523 = vmatpush3.msra.mxu1 %v2086_v57  ;;  %1568 = vmatprep.subr.mxu0 %v657_v62 }
  0x6c   : > { %1524 = vmatprep.subr.mxu1 %v2093_v59  ;;  %1569 = vmatpush3.msra.mxu0 %v657_v62 }
  0x6d   : > { %1525 = vmatpush3.msra.mxu1 %v2093_v59  ;;  %1570 = vmatprep.mubr.msk.f32.mxu0 %vm252_vm0, %v655_v0 }
  0x6e   : > { %1526 = vmatprep.subr.mxu1 %v2100_v61  ;;  %1571 = vmatmul.mubr.msk.f32.vlgmr.msra.gmra.mxu0 %vm252_vm0, %v656_v1 }
  0x6f   : > { %1527 = vmatpush3.msra.mxu1 %v2100_v61  ;;  %1608 = vmatprep.mubr.msk.f32.mxu0 %vm252_vm0, %v1994_v26 }
  0x70   : > { %1528 = vmatprep.subr.mxu1 %v2107_v63  ;;  %1592 = vmatprep.subr.mxu0 %v924_v4 }
  0x71   : > { %1529 = vmatpush3.msra.mxu1 %v2107_v63  ;;  %1593 = vmatpush3.msra.mxu0 %v924_v4 }
  0x72   : > { %1530 = vmatprep.subr.mxu1 %v2113_v2  ;;  %1594 = vmatprep.subr.mxu0 %v923_v5 }
  0x73   : > { %1531 = vmatpush3.msra.mxu1 %v2113_v2  ;;  %1595 = vmatpush3.msra.mxu0 %v923_v5 }
  0x74   : > { %1573 = vmatprep.subr.mxu1 %v2119_v3  ;;  %1596 = vmatprep.subr.mxu0 %v922_v6 }
  0x75   : > { %1597 = vmatpush3.msra.mxu0 %v922_v6 }
  0x76   : > { %1598 = vmatprep.subr.mxu0 %v921_v7 }
  0x77   : > { %1599 = vmatpush3.msra.mxu0 %v921_v7  ;;  %v1322_v7 = vld [vmem:[%s2226_s3 + $0x3] ss:$0 sm:$0xff] }
  0x78   : > { %1600 = vmatprep.subr.mxu0 %v920_v8 }
  0x79   : > { %1601 = vmatpush3.msra.mxu0 %v920_v8 }
  0x7a   : > { %1602 = vmatprep.subr.mxu0 %v919_v9 }
  0x7b   : > { %1603 = vmatpush3.msra.mxu0 %v919_v9 }
  0x7c   : > { %1604 = vmatprep.subr.mxu0 %v918_v10 }
  0x7d   : > { %1605 = vmatpush3.msra.mxu0 %v918_v10 }
  0x7e   : > { %1606 = vmatprep.subr.mxu0 %v917_v11 }
  0x7f   : > { %1607 = vmatpush3.msra.mxu0 %v917_v11 }
  0x80   : > { %1609 = vmatmul.mubr.msk.f32.vlgmr.msra.gmra.mxu0 %vm252_vm0, %v1997_v27  ;;  %1630 = vmatprep.subr.mxu0 %v2006_v36 }
  0x81   : > { %1631 = vmatpush3.msra.mxu0 %v2006_v36  ;;  %v833_v36 = vld [vmem:[#allocation6 + $0x90] sm:$0xff] }
  0x82   : > { %1632 = vmatprep.subr.mxu0 %v2012_v37 }
  0x83   : > { %1633 = vmatpush3.msra.mxu0 %v2012_v37  ;;  %v832_v37 = vld [vmem:[#allocation6 + $0x88] sm:$0xff] }
  0x84   : > { %1634 = vmatprep.subr.mxu0 %v2022_v39 }
  0x85   : > { %1635 = vmatpush3.msra.mxu0 %v2022_v39  ;;  %v1012_v39 = vld [vmem:[#allocation6 + $0x138] sm:$0xff] }
  0x86   : > { %1636 = vmatprep.subr.mxu0 %v2029_v41 }
  0x87   : > { %1637 = vmatpush3.msra.mxu0 %v2029_v41  ;;  %v1010_v41 = vld [vmem:[#allocation6 + $0x128] sm:$0xff] }
  0x88   : > { %1638 = vmatprep.subr.mxu0 %v2034_v43 }
  0x89   : > { %1639 = vmatpush3.msra.mxu0 %v2034_v43  ;;  %v1008_v43 = vld [vmem:[#allocation6 + $0x118] sm:$0xff] }
  0x8a   : > { %1640 = vmatprep.subr.mxu0 %v2041_v45 }
  0x8b   : > { %1641 = vmatpush3.msra.mxu0 %v2041_v45  ;;  %v1006_v45 = vld [vmem:[#allocation6 + $0x108] sm:$0xff] }
  0x8c   : > { %1642 = vmatprep.subr.mxu0 %v2048_v47 }
  0x8d   : > { %1643 = vmatpush3.msra.mxu0 %v2048_v47 }
  0x8e   : > { %1644 = vmatprep.subr.mxu0 %v2055_v49 }
  0x8f   : > { %1645 = vmatpush3.msra.mxu0 %v2055_v49 }
  0x90   : > { %1646 = vmatprep.subr.mxu0 %v2062_v51 }
  0x91   : > { %1647 = vmatpush3.msra.mxu0 %v2062_v51 }
  0x92   : > { %1648 = vmatprep.subr.mxu0 %v2070_v53 }
  0x93   : > { %1649 = vmatpush3.msra.mxu0 %v2070_v53 }
  0x94   : > { %1650 = vmatprep.subr.mxu0 %v2079_v55 }
  0x95   : > { %1651 = vmatpush3.msra.mxu0 %v2079_v55 }
  0x96   : > { %1652 = vmatprep.subr.mxu0 %v2086_v57 }
  0x97   : > { %1653 = vmatpush3.msra.mxu0 %v2086_v57 }
  0x98   : > { %1654 = vmatprep.subr.mxu0 %v2093_v59 }
  0x99   : > { %1655 = vmatpush3.msra.mxu0 %v2093_v59 }
  0x9a   : > { %1656 = vmatprep.subr.mxu0 %v2100_v61 }
  0x9b   : > { %1657 = vmatpush3.msra.mxu0 %v2100_v61 }
  0x9c   : > { %1658 = vmatprep.subr.mxu0 %v2107_v63 }
  0x9d   : > { %1659 = vmatpush3.msra.mxu0 %v2107_v63 }
  0x9e   : > { %1660 = vmatprep.subr.mxu0 %v2113_v2 }
  0x9f   : > { %1661 = vmatpush3.msra.mxu0 %v2113_v2  ;;  %v1321_v2 = vld [vmem:[%s2226_s3 + $0x2] ss:$0 sm:$0xff] }
 0x104   : > { %v1461_v12 = vpop.f32.mrf.mxu1 }
 0x106   : > { %v354_v13 = vpop.f32.mrf.mxu1 }
 0x109   : > { %v1499_v16 = vpop.f32.mrf.mxu0 }
 0x10b   : > { %v527_v23 = vpop.f32.mrf.mxu0 }
 0x114   : > { %v1480_v15 = vpop.f32.mrf.mxu1 }
 0x115   : > { %v441_v17 = vadd.f32 %v1480_v15, %v1461_v12 }
 0x116   : > { %v435_v20 = vpop.f32.mrf.mxu1 }
 0x117   : > { %v537_v21 = vadd.f32 %v1499_v16, %v441_v17  ;;  %v436_v22 = vadd.f32 %v435_v20, %v354_v13 }
 0x119   : > { %v544_v24 = vmul.f32 %v1309_v19, %v537_v21  ;;  %v536_v26 = vadd.f32 %v527_v23, %v436_v22 }
 0x11b   : > { %v543_v27 = vmul.f32 %v1309_v19, %v536_v26  ;;  %v551_v28 = vadd.f32 %v1310_v25, %v544_v24 }
 0x11d   : > { %v550_v29 = vadd.f32 %v1310_v25, %v543_v27  ;;  %v553_v31 = vmax.f32 %v551_v28, 0.0  ;;  %v1553_v52 = vpop.f32.mrf.mxu0 }
 0x11f   : > { %v552_v30 = vmax.f32 %v550_v29, 0.0  ;;  %v740_v53 = vpop.f32.mrf.mxu0 }
 0x121   : > { %1532 = vmatprep.mubr.f32.mxu1 %v552_v30 }
 0x122   : > { %1533 = vmatmul.mubr.f32.vlgmr.msra.gmra.mxu1 %v553_v31 }
 0x123   : > { %1574 = vmatpush3.msra.mxu1 %v2119_v3  ;;  %1589 = vmatprep.mubr.msk.f32.mxu1 %vm252_vm0, %v1986_v14  ;;  %v1002_v14 = vld [vmem:[#allocation2 + $0x4] sm:$0xff] }
 0x124   : > { %1575 = vmatprep.subr.mxu1 %v837_v32 }
 0x125   : > { %1576 = vmatpush3.msra.mxu1 %v837_v32 }
 0x126   : > { %1577 = vmatprep.subr.mxu1 %v836_v33 }
 0x127   : > { %1578 = vmatpush3.msra.mxu1 %v836_v33 }
 0x128   : > { %1579 = vmatprep.subr.mxu1 %v835_v34 }
 0x129   : > { %1580 = vmatpush3.msra.mxu1 %v835_v34 }
 0x12a   : > { %1581 = vmatprep.subr.mxu1 %v834_v35 }
 0x12b   : > { %1582 = vmatpush3.msra.mxu1 %v834_v35 }
 0x12c   : > { %1583 = vmatprep.subr.mxu1 %v833_v36 }
 0x12d   : > { %1584 = vmatpush3.msra.mxu1 %v833_v36 }
 0x12e   : > { %1585 = vmatprep.subr.mxu1 %v832_v37  ;;  %v1572_v54 = vpop.f32.mrf.mxu0 }
 0x12f   : > { %1586 = vmatpush3.msra.mxu1 %v832_v37  ;;  %v827_v57 = vadd.f32 %v1572_v54, %v1553_v52 }
 0x130   : > { %1587 = vmatprep.subr.mxu1 %v831_v38  ;;  %v821_v56 = vpop.f32.mrf.mxu0 }
 0x131   : > { %1588 = vmatpush3.msra.mxu1 %v831_v38  ;;  %v822_v60 = vadd.f32 %v821_v56, %v740_v53 }
 0x132   : > { %1590 = vmatmul.mubr.msk.f32.vlgmr.msra.gmra.mxu1 %vm252_vm0, %v1990_v18  ;;  %1611 = vmatprep.subr.mxu1 %v1012_v39  ;;  %v1005_v18 = vld [vmem:[#allocation6 + $0x100] sm:$0xff] }
 0x133   : > { %1612 = vmatpush3.msra.mxu1 %v1012_v39  ;;  %1627 = vmatprep.mubr.msk.f32.mxu1 %vm252_vm0, %v1002_v14 }
 0x134   : > { %1613 = vmatprep.subr.mxu1 %v1011_v40 }
 0x135   : > { %1614 = vmatpush3.msra.mxu1 %v1011_v40 }
 0x136   : > { %1615 = vmatprep.subr.mxu1 %v1010_v41 }
 0x137   : > { %1616 = vmatpush3.msra.mxu1 %v1010_v41 }
 0x138   : > { %1617 = vmatprep.subr.mxu1 %v1009_v42 }
 0x139   : > { %1618 = vmatpush3.msra.mxu1 %v1009_v42 }
 0x13a   : > { %1619 = vmatprep.subr.mxu1 %v1008_v43 }
 0x13b   : > { %1620 = vmatpush3.msra.mxu1 %v1008_v43 }
 0x13c   : > { %1621 = vmatprep.subr.mxu1 %v1007_v44 }
 0x13d   : > { %1622 = vmatpush3.msra.mxu1 %v1007_v44 }
 0x13e   : > { %1623 = vmatprep.subr.mxu1 %v1006_v45 }
 0x13f   : > { %1624 = vmatpush3.msra.mxu1 %v1006_v45 }
 0x140   : > { %1625 = vmatprep.subr.mxu1 %v1005_v18  ;;  %v1610_v59 = vpop.f32.mrf.mxu0 }
 0x141   : > { %1626 = vmatpush3.msra.mxu1 %v1005_v18 }
 0x142   : > { %1628 = vmatmul.mubr.msk.f32.vlgmr.msra.gmra.mxu1 %vm252_vm0, %v1003_v46  ;;  %v991_v63 = vpop.f32.mrf.mxu0 }
 0x1e2   : > { %v1534_v47 = vpop.f32.mrf.mxu1 }
 0x1e3   : > { %v647_v49 = vsel %vm645_vm2, %v1534_v47, 0.0 }
 0x1e4   : > { %v636_v48 = vpop.f32.mrf.mxu1 }
 0x1e5   : > { %v646_v50 = vsel %vm645_vm2, %v636_v48, 0.0 }
 0x1e6   : > { %v648_v51 = vadd.f32 %v647_v49, %v646_v50 }
 0x1e8   : > { %v649_v27 = vrot.slane %v648_v51, 4 }
 0x1ea   : > { %v650_v28 = vadd.f32 %v649_v27, %v648_v51 }
 0x1ec   : > { %v651_v29 = vrot.slane %v650_v28, 2 }
 0x1ee   : > { %v652_v30 = vadd.f32 %v651_v29, %v650_v28 }
 0x1f0   : > { %v653_v31 = vrot.slane %v652_v30, 1 }
 0x1f2   : > { %v1591_v55 = vpop.f32.mrf.mxu1  ;;  %v654_v32 = vadd.f32 %v653_v31, %v652_v30 }
 0x1f3   : > { %v915_v61 = vadd.f32 %v1591_v55, %v827_v57 }
 0x1f4   : > { %v905_v58 = vpop.f32.mrf.mxu1 }
 0x1f5   : > { %v914_v62 = vadd.f32 %v905_v58, %v822_v60  ;;  %v1001_v0 = vadd.f32 %v1610_v59, %v915_v61 }
 0x1f7   : > { %v1000_v3 = vadd.f32 %v991_v63, %v914_v62 }
 0x202   : > { %v1629_v1 = vpop.f32.mrf.mxu1 }
 0x203   : > { %v1095_v4 = vadd.f32 %v1629_v1, %v1001_v0 }
 0x204   : > { %v1085_v5 = vpop.f32.mrf.mxu1 }
 0x205   : > { %v1102_v6 = vmul.f32 %v1321_v2, %v1095_v4  ;;  %v1094_v8 = vadd.f32 %v1085_v5, %v1000_v3 }
 0x207   : > { %v1101_v9 = vmul.f32 %v1321_v2, %v1094_v8  ;;  %v1109_v10 = vadd.f32 %v1322_v7, %v1102_v6 }
 0x209   : > { %v1108_v11 = vadd.f32 %v1322_v7, %v1101_v9  ;;  %v1111_v13 = vmax.f32 %v1109_v10, 0.0 }
 0x20b   : > { %v1110_v12 = vmax.f32 %v1108_v11, 0.0 }
 0x20d   : > { %1662 = vmatprep.mubr.f32.mxu0 %v1110_v12 }
 0x20e   : > { %1663 = vmatmul.mubr.f32.vlgmr.msra.gmra.mxu0 %v1111_v13 }
 0x2ce   : > { %v1664_v15 = vpop.f32.mrf.mxu0 }
 0x2cf   : > { %v1188_v17 = vsel %vm645_vm2, %v1664_v15, 0.0 }
 0x2d0   : > { %v1178_v16 = vpop.f32.mrf.mxu0 }
 0x2d1   : > { %v1187_v19 = vsel %vm645_vm2, %v1178_v16, 0.0 }
 0x2d2   : > { %v1189_v20 = vadd.f32 %v1188_v17, %v1187_v19 }
 0x2d4   : > { %v1190_v21 = vrot.slane %v1189_v20, 4 }
 0x2d6   : > { %v1191_v22 = vadd.f32 %v1190_v21, %v1189_v20 }
 0x2d8   : > { %v1192_v23 = vrot.slane %v1191_v22, 2 }
 0x2da   : > { %v1193_v24 = vadd.f32 %v1192_v23, %v1191_v22 }
 0x2dc   : > { %v1194_v25 = vrot.slane %v1193_v24, 1 }
 0x2de   : > { %v1195_v26 = vadd.f32 %v1194_v25, %v1193_v24 }
 0x2e0   : > { %1197 = vrot.lane.b32.xlu0 %v1195_v26, %s1856_s16 }
 0x352   : > { %v1198_v33 = vpop.permute.xlu0 %1197 }
 0x353   : > { %v1200_v34 = vsel %vm645_vm2, %v654_v32, %v1198_v33 }
 0x354   : > { %1202 = vst.msk [vmem:[%s246_s25] sm:$0x1] %vm1201_vm3, %v1200_v34 }
 0x355   : > { %1794 = shalt.err (!%p1791_p3)
}
 0x356   : > { %s1795_s12 = scalar_lea.hbm %s2187_s7, 16  ;;  %s1799_s15 = scalar_lea.hbm %s2228_s5, 32 }
 0x357   : > { %p1796_p2 = scmp.ne.s32.totalorder %s2187_s7, %s1795_s12  ;;  %p1800_p7 = scmp.lt.s32.totalorder %s2187_s7, %s2228_s5 }
 0x358   : > { %p1801_p6 = scmp.lt.s32.totalorder %s1799_s15, %s1795_s12 }
 0x359   : > { %p1797_p4 = pnand %p1796_p2, %p1926_p5 }
 0x35a   : > { %p1802_p9 = por %p1801_p6, %p1800_p7 }
 0x35b   : > { %p1798_p13 = pneg %p1797_p4 }
 0x35d   : > { %p1803_p10 = pnand %p1802_p9, %p1798_p13 }
 0x35f   : > { %1806 = shalt.err (!%p1803_p10)
}
 0x360   : > { %1673 = dma.vmem_to_hbm [thread:$0]  (%p1926_p5), %s1217_s26, 16, %s2187_s7, %s1204_s8  }
 0x361 PF: > { %p1690_p12 = scmp.ge.s32.totalorder %s1849_s21, 2  ;;  %s1228_s23 = sand.u32 1, %s1837_s18  }
 0x362   : > { %p2238_p8 = scmp.ne.s32.totalorder %s2231_s29, 0  ;;  %s1229_s25 = scalar_lea.sflag [#allocation5], %s1228_s23 }
 0x364   : > { %p1683_p11 = pnand %p1690_p12, %p2238_p8 }
 0x366   : > { %p1684_p0 = pneg %p1683_p11 }
 0x368   : > { %1832 = dma.done.wait (%p1684_p0), %s1229_s25, 16  }
 0x369   : > { %1834 = vsyncadd (%p1684_p0), %s1229_s25, 4294967280  ;;  %p17_p1 = scmp.ge.s32.totalorder %s1913_s24, 4   ;;  %s2239_s18 = smov %s1841_s19 }
 0x36a   : > { %s2240_s19 = smov %s1845_s20  ;;  %s2241_s20 = smov %s1924_s27 }
 0x36b   : > { %s2242_s21 = smov %s1913_s24  ;;  %19 = sbr.rel (!%p17_p1) target bundleno = 5 (0x5), region = 90 }
 0x370   :  { %1233 = vsyncpa [#allocation4], 1 }
 0x371   :  { %1235 = vsyncpa [#allocation4 + $0x1], 1 }
 0x372   :  { %1236 = vsyncpa [#allocation7], 1 }
 0x373   :  { %1237 = vsyncpa [#allocation5], 1 }
 0x374   :  { %1239 = vsyncpa [#allocation5 + $0x1], 1 }

</bundles_post_ra>
